<compile_context>
chip_gen: v7x
topology: tpu7x:2x2x1
jax: 0.10.0
libtpu: 0.0.40
codegen_flags: <defaults>
</compile_context>

<pallas_src>
import functools

import jax
import jax.numpy as jnp
from jax.experimental import pallas as pl
from jax.experimental.pallas import tpu as pltpu


def _vmem_limit_bytes():
    # per-generation scoped-VMEM budget: ~half of physical, capped at 64 MiB.
    try:
        info = pltpu.get_tpu_info()
        cap = int(getattr(info, "vmem_capacity_bytes", 128 * 1024 * 1024))
    except Exception:  # pragma: no cover - conservative fallback
        cap = 128 * 1024 * 1024
    return int(min(64 * 1024 * 1024, max(32 * 1024 * 1024, cap // 2)))


_VMEM_LIMIT = _vmem_limit_bytes()


# ----------------------------------------------------------------------------
# Generic GEMM (bf16 x bf16 on the MXU, fp32 accumulate)
# ----------------------------------------------------------------------------
def _matmul_kernel(a_ref, b_ref, o_ref):
    a = a_ref[...].astype(jnp.bfloat16)
    o_ref[...] = jnp.dot(a, b_ref[...],
                         preferred_element_type=jnp.float32).astype(o_ref.dtype)


def pallas_matmul(a, w_bf16, *, out_dtype=jnp.float32):
    """(M,K) @ (K,N)bf16 -> (M,N).  M tiled so the grid has >=2 steps (v7x)."""
    M, K = a.shape
    K2, N = w_bf16.shape
    assert K == K2
    if M <= 8:
        tm = M
    elif M <= 512:
        tm = -(-(M // 2) // 8) * 8      # ~M/2 rounded up to 8 -> 2 grid steps
    else:
        tm = 256
    return pl.pallas_call(
        _matmul_kernel,
        out_shape=jax.ShapeDtypeStruct((M, N), out_dtype),
        grid=(pl.cdiv(M, tm),),
        in_specs=[pl.BlockSpec((tm, K), lambda i: (i, 0)),
                  pl.BlockSpec((K, N), lambda i: (0, 0))],
        out_specs=pl.BlockSpec((tm, N), lambda i: (i, 0)),
        compiler_params=pltpu.CompilerParams(
            dimension_semantics=("parallel",),
            vmem_limit_bytes=_VMEM_LIMIT),
    )(a, w_bf16)


# ----------------------------------------------------------------------------
# Fused adaLN(LayerNorm + modulate) prologue + GEMM
# ----------------------------------------------------------------------------
def _ln_mod_gemm_kernel(x_ref, g_ref, b_ref, sh_ref, sc_ref, w_ref, o_ref, *, eps):
    x = x_ref[...]                                        # (L, C) fp32
    mu = jnp.mean(x, axis=-1, keepdims=True)
    xc = x - mu
    var = jnp.mean(xc * xc, axis=-1, keepdims=True)
    xn = xc * jax.lax.rsqrt(var + eps)
    y = (xn * g_ref[...] + b_ref[...]) * (1.0 + sc_ref[...]) + sh_ref[...]
    o_ref[...] = jnp.dot(y.astype(jnp.bfloat16), w_ref[...],
                         preferred_element_type=jnp.float32).astype(o_ref.dtype)


def ln_mod_matmul(x_blc, gamma, beta, shift, scale, w_bf16, *, eps, out_dtype):
    B, L, C = x_blc.shape
    Nout = w_bf16.shape[1]
    g = gamma.reshape(1, C).astype(jnp.float32)
    bb = beta.reshape(1, C).astype(jnp.float32)
    sh = shift.reshape(B, 1, C).astype(jnp.float32)
    sc = scale.reshape(B, 1, C).astype(jnp.float32)
    # TODO(synk): tile the L axis too for very large images (grid=(B, L/tl)).
    return pl.pallas_call(
        functools.partial(_ln_mod_gemm_kernel, eps=eps),
        out_shape=jax.ShapeDtypeStruct((B, L, Nout), out_dtype),
        grid=(B,),
        in_specs=[
            pl.BlockSpec((None, L, C), lambda i: (i, 0, 0)),
            pl.BlockSpec((1, C), lambda i: (0, 0)),
            pl.BlockSpec((1, C), lambda i: (0, 0)),
            pl.BlockSpec((None, 1, C), lambda i: (i, 0, 0)),
            pl.BlockSpec((None, 1, C), lambda i: (i, 0, 0)),
            pl.BlockSpec((C, Nout), lambda i: (0, 0)),
        ],
        out_specs=pl.BlockSpec((None, L, Nout), lambda i: (i, 0, 0)),
        compiler_params=pltpu.CompilerParams(
            dimension_semantics=("parallel",), vmem_limit_bytes=_VMEM_LIMIT),
    )(x_blc, g, bb, sh, sc, w_bf16)


# ----------------------------------------------------------------------------
# Depthwise 3x3 conv (in-kernel zero padding, optional fused SiLU)
# ----------------------------------------------------------------------------
def _dwconv3_kernel(x_ref, w_ref, b_ref, o_ref, *, H, W, act):
    C = o_ref.shape[-1]
    x = x_ref[...].astype(jnp.float32)                    # (H, W, C)
    zr = jnp.zeros((1, W, C), jnp.float32)
    zc = jnp.zeros((H + 2, 1, C), jnp.float32)
    xp = jnp.concatenate([zr, x, zr], axis=0)             # (H+2, W,   C)
    xp = jnp.concatenate([zc, xp, zc], axis=1)            # (H+2, W+2, C)  in-kernel pad
    acc = jnp.zeros((H, W, C), jnp.float32)
    for ki in range(3):
        for kj in range(3):
            acc = acc + xp[ki:ki + H, kj:kj + W, :] * w_ref[ki, kj:kj + 1, :]
    acc = acc + b_ref[...]
    if act:                                               # fused SiLU
        acc = acc * (1.0 / (1.0 + jnp.exp(-acc)))
    o_ref[...] = acc.astype(o_ref.dtype)


def dwconv3x3(x_nhwc, w, b, *, act, out_dtype):
    B, H, W, C = x_nhwc.shape
    bb = b.reshape(1, 1, C).astype(jnp.float32)
    return pl.pallas_call(
        functools.partial(_dwconv3_kernel, H=H, W=W, act=act),
        out_shape=jax.ShapeDtypeStruct((B, H, W, C), out_dtype),
        grid=(B,),
        in_specs=[
            pl.BlockSpec((None, H, W, C), lambda i: (i, 0, 0, 0)),
            pl.BlockSpec((3, 3, C), lambda i: (0, 0, 0)),
            pl.BlockSpec((1, 1, C), lambda i: (0, 0, 0)),
        ],
        out_specs=pl.BlockSpec((None, H, W, C), lambda i: (i, 0, 0, 0)),
        compiler_params=pltpu.CompilerParams(
            dimension_semantics=("parallel",), vmem_limit_bytes=_VMEM_LIMIT),
    )(x_nhwc, w.astype(jnp.float32), bb)


# ----------------------------------------------------------------------------
# Selective scan: vectorized chunk pre-pass + minimal recurrence + vector epilogue
# ----------------------------------------------------------------------------
def _selscan_kernel(u_ref, dl_ref, b_ref, c_ref, at_ref, db_ref, dv_ref,
                    mnm_ref, qsel_ref, y_ref,
                    h_ref, da_ref, dbu_ref, cb_ref, hs_ref, *, n_state):
    N = n_state
    Lc, KD = u_ref.shape
    KN = b_ref.shape[-1]

    @pl.when(pl.program_id(1) == 0)                       # new batch item -> reset state
    def _():
        h_ref[...] = jnp.zeros_like(h_ref)

    # ---- phase 1: everything that does NOT depend on h, vectorized over the chunk
    u = u_ref[...].astype(jnp.float32)                    # (Lc, KD)
    raw = dl_ref[...].astype(jnp.float32) + db_ref[...]
    dlt = jnp.maximum(raw, 0.0) + jnp.log(1.0 + jnp.exp(-jnp.abs(raw)))  # softplus
    dtu = dlt * u
    da_ref[...] = jnp.exp(dlt[:, None, :] * at_ref[...][None, :, :])     # (Lc, N, KD)

    # broadcast B_t / C_t over state+channel dims with ONE merged chunk-level matmul
    bc = jnp.concatenate([b_ref[...], c_ref[...]], axis=0).astype(jnp.float32)   # (2Lc, KN)
    bc3 = bc[:, None, :] * mnm_ref[...][None, :, :]                              # (2Lc, N, KN)
    bcb = jnp.dot(bc3.reshape(2 * Lc * N, KN), qsel_ref[...],
                  preferred_element_type=jnp.float32).reshape(2 * Lc, N, KD)
    dbu_ref[...] = bcb[:Lc] * dtu[:, None, :]             # dt * B_t * u_t
    cb_ref[...] = bcb[Lc:]                                 # C_t broadcast

    # ---- phase 2: minimal recurrence  h = exp(A*dt)*h + dt*B*u
    # TODO(synk): pack 2-4 batch items along the sublane dim of h to hide the
    # recurrence latency chain further.
    def body(t, h):
        h = da_ref[t] * h + dbu_ref[t]
        hs_ref[t] = h
        return h

    h_ref[...] = jax.lax.fori_loop(0, Lc, body, h_ref[...], unroll=4)

    # ---- phase 3: y = sum_n C*h + D*u, vectorized (full-tile stores)
    y_ref[...] = jnp.sum(cb_ref[...] * hs_ref[...], axis=1) + dv_ref[...] * u


def _pick_chunk(L):
    for c in (256, 128, 64, 32, 16, 8):
        if c <= L and L % c == 0:
            return c
    return L


def selective_scan(u, dl, Bm, Cm, A_T, dtb, Dv, maskNM, selQ, n_state):
    B, L, KD = u.shape
    KN = Bm.shape[-1]
    N = n_state
    Lc = _pick_chunk(L)
    n_chunks = L // Lc
    return pl.pallas_call(
        functools.partial(_selscan_kernel, n_state=N),
        out_shape=jax.ShapeDtypeStruct((B, L, KD), jnp.float32),
        grid=(B, n_chunks),
        in_specs=[
            pl.BlockSpec((None, Lc, KD), lambda b, l: (b, l, 0)),
            pl.BlockSpec((None, Lc, KD), lambda b, l: (b, l, 0)),
            pl.BlockSpec((None, Lc, KN), lambda b, l: (b, l, 0)),
            pl.BlockSpec((None, Lc, KN), lambda b, l: (b, l, 0)),
            pl.BlockSpec((N, KD), lambda b, l: (0, 0)),
            pl.BlockSpec((1, KD), lambda b, l: (0, 0)),
            pl.BlockSpec((1, KD), lambda b, l: (0, 0)),
            pl.BlockSpec((N, KN), lambda b, l: (0, 0)),
            pl.BlockSpec((KN, KD), lambda b, l: (0, 0)),
        ],
        out_specs=pl.BlockSpec((None, Lc, KD), lambda b, l: (b, l, 0)),
        scratch_shapes=[
            pltpu.VMEM((N, KD), jnp.float32),        # h carried across L-chunks
            pltpu.VMEM((Lc, N, KD), jnp.float32),    # exp(A*dt)
            pltpu.VMEM((Lc, N, KD), jnp.float32),    # dt*B*u
            pltpu.VMEM((Lc, N, KD), jnp.float32),    # C broadcast
            pltpu.VMEM((Lc, N, KD), jnp.float32),    # h history for the chunk
        ],
        compiler_params=pltpu.CompilerParams(
            dimension_semantics=("parallel", "arbitrary"),
            vmem_limit_bytes=_VMEM_LIMIT),
    )(u, dl, Bm, Cm, A_T, dtb, Dv, maskNM, selQ)


# ----------------------------------------------------------------------------
# Fused SS2D epilogue: out_norm LN + silu(z) gate + out_proj + gate_msa + residual
# ----------------------------------------------------------------------------
def _ss2d_out_kernel(y_ref, z_ref, g_ref, b_ref, w_ref, gate_ref, res_ref, o_ref, *, eps):
    y = y_ref[...]                                        # (L, d) fp32
    mu = jnp.mean(y, axis=-1, keepdims=True)
    yc = y - mu
    var = jnp.mean(yc * yc, axis=-1, keepdims=True)
    yn = yc * jax.lax.rsqrt(var + eps) * g_ref[...] + b_ref[...]
    z = z_ref[...].astype(jnp.float32)
    yn = yn * (z * (1.0 / (1.0 + jnp.exp(-z))))           # * SiLU(z) gate
    o = jnp.dot(yn.astype(jnp.bfloat16), w_ref[...], preferred_element_type=jnp.float32)
    o_ref[...] = res_ref[...] + gate_ref[...] * o         # gate_msa * out + residual


def ss2d_out(y, z, gamma, beta, w_out, gate, x_res, *, eps):
    B, L, d = y.shape
    C = w_out.shape[1]
    g = gamma.reshape(1, d).astype(jnp.float32)
    bb = beta.reshape(1, d).astype(jnp.float32)
    gt = gate.reshape(B, 1, C).astype(jnp.float32)
    return pl.pallas_call(
        functools.partial(_ss2d_out_kernel, eps=eps),
        out_shape=jax.ShapeDtypeStruct((B, L, C), jnp.float32),
        grid=(B,),
        in_specs=[
            pl.BlockSpec((None, L, d), lambda i: (i, 0, 0)),
            pl.BlockSpec((None, L, d), lambda i: (i, 0, 0)),
            pl.BlockSpec((1, d), lambda i: (0, 0)),
            pl.BlockSpec((1, d), lambda i: (0, 0)),
            pl.BlockSpec((d, C), lambda i: (0, 0)),
            pl.BlockSpec((None, 1, C), lambda i: (i, 0, 0)),
            pl.BlockSpec((None, L, C), lambda i: (i, 0, 0)),
        ],
        out_specs=pl.BlockSpec((None, L, C), lambda i: (i, 0, 0)),
        compiler_params=pltpu.CompilerParams(
            dimension_semantics=("parallel",), vmem_limit_bytes=_VMEM_LIMIT),
    )(y, z, g, bb, w_out, gt, x_res)


# ----------------------------------------------------------------------------
# Fused transposed (channel) attention: all heads + project_out + gate + residual
# ----------------------------------------------------------------------------
def _chan_attn_kernel(qkv_ref, t_ref, w_ref, gate_ref, res_ref, o_ref, *, heads):
    L, threeC = qkv_ref.shape
    C = threeC // 3
    ch = C // heads
    qkv = qkv_ref[...]                                    # (L, 3C) fp32
    outs = []
    for h in range(heads):                                # static loop over heads
        q = qkv[:, h * ch:(h + 1) * ch]
        k = qkv[:, C + h * ch:C + (h + 1) * ch]
        v = qkv[:, 2 * C + h * ch:2 * C + (h + 1) * ch]
        qn = q * jax.lax.rsqrt(jnp.maximum(jnp.sum(q * q, axis=0, keepdims=True), 1e-24))
        kn = k * jax.lax.rsqrt(jnp.maximum(jnp.sum(k * k, axis=0, keepdims=True), 1e-24))
        attn = jax.lax.dot_general(qn, kn, (((0,), (0,)), ((), ())),
                                   preferred_element_type=jnp.float32) * t_ref[h]
        m = jnp.max(attn, axis=-1, keepdims=True)
        e = jnp.exp(attn - m)
        p_attn = e * pl.reciprocal(jnp.sum(e, axis=-1, keepdims=True), approx=True)
        outs.append(jax.lax.dot_general(v, p_attn, (((1,), (1,)), ((), ())),
                                        preferred_element_type=jnp.float32))  # (L, ch)
    out = outs[0] if heads == 1 else jnp.concatenate(outs, axis=1)             # (L, C)
    o = jnp.dot(out.astype(jnp.bfloat16), w_ref[...], preferred_element_type=jnp.float32)
    o_ref[...] = res_ref[...] + gate_ref[...] * o         # gate_mlp * out + residual


def channel_attention(qkv_blc, temperature, w_proj, gate, x_res, *, heads):
    B, L, threeC = qkv_blc.shape
    C = threeC // 3
    gt = gate.reshape(B, 1, C).astype(jnp.float32)
    return pl.pallas_call(
        functools.partial(_chan_attn_kernel, heads=heads),
        out_shape=jax.ShapeDtypeStruct((B, L, C), jnp.float32),
        grid=(B,),
        in_specs=[
            pl.BlockSpec((None, L, threeC), lambda i: (i, 0, 0)),
            pl.BlockSpec(memory_space=pltpu.MemorySpace.SMEM),   # temperature scalars
            pl.BlockSpec((C, C), lambda i: (0, 0)),
            pl.BlockSpec((None, 1, C), lambda i: (i, 0, 0)),
            pl.BlockSpec((None, L, C), lambda i: (i, 0, 0)),
        ],
        out_specs=pl.BlockSpec((None, L, C), lambda i: (i, 0, 0)),
        compiler_params=pltpu.CompilerParams(
            dimension_semantics=("parallel",), vmem_limit_bytes=_VMEM_LIMIT),
    )(qkv_blc, temperature.reshape(heads).astype(jnp.float32), w_proj, gt, x_res)


# ----------------------------------------------------------------------------
# Module forward (thin glue around the fused kernels)
# ----------------------------------------------------------------------------
def ss2d_branch(p, x_blc, shift, scale, gate, H, W):
    sp = p["ss2d"]
    B, L, C = x_blc.shape
    d, N, K = sp["d_inner"], sp["d_state"], 4

    # fused adaLN-LN(norm1) + modulate + in_proj GEMM (bf16 out, 2d=128 lanes dense)
    xz = ln_mod_matmul(x_blc, p["norm1_w"], p["norm1_b"], shift, scale,
                       sp["in_proj_wt"], eps=1e-5, out_dtype=jnp.bfloat16)  # (B,L,2d)
    x_in = xz[..., :d].reshape(B, H, W, d)
    z = xz[..., d:]                                                         # (B,L,d) bf16

    x_act = dwconv3x3(x_in, sp["conv_w"], sp["conv_b"],
                      act=True, out_dtype=jnp.bfloat16)                     # conv + SiLU

    x_hw = x_act.reshape(B, L, d)
    x_wh = jnp.transpose(x_act, (0, 2, 1, 3)).reshape(B, L, d)

    # fused direction projections (dt_proj folded into x_proj): 2 GEMMs, bf16 in/out
    M1 = d + 2 * N
    P_hw = pallas_matmul(x_hw.reshape(B * L, d), sp["proj_hw_w"],
                         out_dtype=jnp.bfloat16).reshape(B, L, 2 * M1)
    P_wh = pallas_matmul(x_wh.reshape(B * L, d), sp["proj_wh_w"],
                         out_dtype=jnp.bfloat16).reshape(B, L, 2 * M1)

    def blk(P, o):
        return P[..., o:o + d], P[..., o + d:o + d + N], P[..., o + d + N:o + d + 2 * N]

    dt0, B0, C0 = blk(P_hw, 0)
    dt2, B2, C2 = blk(P_hw, M1)
    dt1, B1, C1 = blk(P_wh, 0)
    dt3, B3, C3 = blk(P_wh, M1)

    rev = lambda a: a[:, ::-1, :]
    # TODO(synk): fuse this bf16 packing (concat + reverse) into the dir-proj GEMM
    # epilogue via out_specs index maps to remove the remaining copy passes.
    u_pack = jnp.concatenate([x_hw, x_wh, rev(x_hw), rev(x_wh)], axis=-1)    # (B,L,4d) bf16
    dl_pack = jnp.concatenate([dt0, dt1, rev(dt2), rev(dt3)], axis=-1)       # bf16
    B_pack = jnp.concatenate([B0, B1, rev(B2), rev(B3)], axis=-1)            # (B,L,4N) bf16
    C_pack = jnp.concatenate([C0, C1, rev(C2), rev(C3)], axis=-1)            # bf16

    y_pack = selective_scan(u_pack, dl_pack, B_pack, C_pack,
                            sp["A_T"], sp["dtb_pack"], sp["D_pack"],
                            sp["maskNM"], sp["selQ"], N)                     # (B,L,4d) f32

    y_hw = y_pack[..., 0:d] + rev(y_pack[..., 2 * d:3 * d])
    y_wh = y_pack[..., d:2 * d] + rev(y_pack[..., 3 * d:4 * d])
    y = y_hw + jnp.transpose(y_wh.reshape(B, W, H, d), (0, 2, 1, 3)).reshape(B, L, d)

    # fused: out_norm LN + silu(z) gate + out_proj + gate_msa + residual add
    # TODO(synk): pad out_proj/project_out weights to a 128-lane output slab when
    # hidden < 128 to turn the masked stores into dense vst.
    return ss2d_out(y, z, sp["out_norm_w"], sp["out_norm_b"], sp["out_proj_wt"],
                    gate, x_blc, eps=1e-5)                # dropout: eval-mode identity


def attn_branch(p, x_blc, shift, scale, gate, H, W):
    ap = p["attn"]
    B, L, C = x_blc.shape
    # fused LN(norm2, no affine, eps=1e-6) + modulate + qkv 1x1 conv
    qkv = ln_mod_matmul(x_blc, p["norm2_w"], p["norm2_b"], shift, scale,
                        ap["qkv_wt"], eps=1e-6, out_dtype=jnp.bfloat16)      # (B,L,3C)
    qkv = dwconv3x3(qkv.reshape(B, H, W, 3 * C), ap["qkv_dw_w"], ap["qkv_dw_b"],
                    act=False, out_dtype=jnp.float32).reshape(B, L, 3 * C)
    # fused: channel attention (all heads) + project_out + gate_mlp + residual add
    return channel_attention(qkv, ap["temperature"], ap["proj_wt"],
                             gate, x_blc, heads=ap["heads"])


def mamba_block_forward(p, x_nchw, c, t):
    """x: (B,C,H,W) NCHW, c: context (unused, cross=False), t: (B,time_emb_dim)."""
    del c  # TODO(synk): conditioning path of SS2D unknown; TransposedAttention ignores c.
    B, C, H, W = x_nchw.shape
    L = H * W
    x = jnp.transpose(x_nchw, (0, 2, 3, 1)).reshape(B, L, C).astype(jnp.float32)

    mods = pallas_matmul(jax.nn.silu(t.astype(jnp.float32)), p["ada_wt"]) + p["ada_b"]
    sh_msa, sc_msa, g_msa, sh_mlp, sc_mlp, g_mlp = jnp.split(mods, 6, axis=1)

    x = ss2d_branch(p, x, sh_msa, sc_msa, g_msa, H, W)    # x + gate_msa * SS2D(...)
    x = attn_branch(p, x, sh_mlp, sc_mlp, g_mlp, H, W)    # x + gate_mlp * Attn(...)

    return jnp.transpose(x.reshape(B, H, W, C), (0, 3, 1, 2))     # back to NCHW


# ----------------------------------------------------------------------------
# Deterministic parameter construction (packed / bf16 derived weights)
# ----------------------------------------------------------------------------
def build_params(key, hidden, d_state, expand, time_emb_dim):
    d = expand * hidden
    N = d_state
    R = max(1, (hidden + 15) // 16)      # dt_rank = ceil(d_model / 16)
    K = 4
    heads = hidden // 32
    ks = jax.random.split(key, 16)

    def nrm(k, shape, scale=0.1):
        return scale * jax.random.normal(k, shape, jnp.float32)

    in_proj_w = nrm(ks[2], (2 * d, hidden))
    x_proj_w = nrm(ks[5], (K, R + 2 * N, d))
    dt_w = nrm(ks[6], (K, d, R))
    dt_b = nrm(ks[7], (K, d), 0.01)
    A_row = jnp.log(jnp.arange(1, N + 1, dtype=jnp.float32))
    A_logs = jnp.tile(A_row[None, :], (K * d, 1))
    Ds = jnp.ones((K * d,), jnp.float32)
    out_proj_w = nrm(ks[8], (hidden, d))
    qkv_w = nrm(ks[9], (3 * hidden, hidden))
    proj_w = nrm(ks[11], (hidden, hidden))
    ada_w = nrm(ks[0], (6 * hidden, time_emb_dim))

    # fold dt_proj into x_proj and fuse direction pairs (0,2) / (1,3)
    Wk = []
    for k in range(K):
        xw = x_proj_w[k]                              # (R+2N, d)
        Wdt = (dt_w[k] @ xw[:R]).T                    # (d, d)
        Wk.append(jnp.concatenate([Wdt, xw[R:R + N].T, xw[R + N:].T], axis=1))
    proj_hw_w = jnp.concatenate([Wk[0], Wk[2]], axis=1).astype(jnp.bfloat16)
    proj_wh_w = jnp.concatenate([Wk[1], Wk[3]], axis=1).astype(jnp.bfloat16)

    # lane-packed scan constants (k-major: lane = k*d + j, k*N + n)
    A = -jnp.exp(A_logs)                              # (K*d, N)
    A_T = jnp.transpose(A.reshape(K, d, N), (2, 0, 1)).reshape(N, K * d)
    D_pack = Ds.reshape(1, K * d)
    dtb_pack = dt_b.reshape(1, K * d)
    m_idx = jnp.arange(K * N)
    maskNM = (m_idx[None, :] % N == jnp.arange(N)[:, None]).astype(jnp.float32)       # (N, K*N)
    selQ = (m_idx[:, None] // N == jnp.arange(K * d)[None, :] // d).astype(jnp.float32)  # (K*N, K*d)

    return {
        "norm1_w": jnp.ones((hidden,), jnp.float32),
        "norm1_b": jnp.zeros((hidden,), jnp.float32),
        "norm2_w": jnp.ones((hidden,), jnp.float32),   # norm2 has no affine params
        "norm2_b": jnp.zeros((hidden,), jnp.float32),
        # NOTE: PyTorch zero-inits adaLN (identity block); use small non-zero
        # deterministic values so every kernel is exercised.
        "ada_wt": ada_w.T.astype(jnp.bfloat16),
        "ada_b": nrm(ks[1], (6 * hidden,)),
        "ss2d": {
            "d_inner": d, "d_state": N, "dt_rank": R,
            "in_proj_wt": in_proj_w.T.astype(jnp.bfloat16),
            "conv_w": nrm(ks[3], (3, 3, d)),
            "conv_b": nrm(ks[4], (d,)),
            "proj_hw_w": proj_hw_w,
            "proj_wh_w": proj_wh_w,
            "A_T": A_T,
            "D_pack": D_pack,
            "dtb_pack": dtb_pack,
            "maskNM": maskNM,
            "selQ": selQ,
            "out_norm_w": jnp.ones((d,), jnp.float32),
            "out_norm_b": jnp.zeros((d,), jnp.float32),
            "out_proj_wt": out_proj_w.T.astype(jnp.bfloat16),
        },
        "attn": {
            "heads": heads,
            "temperature": jnp.ones((heads,), jnp.float32),
            "qkv_wt": qkv_w.T.astype(jnp.bfloat16),
            "qkv_dw_w": nrm(ks[10], (3, 3, 3 * hidden)),
            "qkv_dw_b": jnp.zeros((3 * hidden,), jnp.float32),   # bias=False in module
            "proj_wt": proj_w.T.astype(jnp.bfloat16),
        },
    }


if __name__ == "__main__":
    # hidden_size must be a multiple of 32 (heads = hidden // 32) -> channels = 32.
    B, hidden, H, W = 2, 32, 8, 8
    d_state, expand, time_emb_dim = 8, 2, 32

    key = jax.random.PRNGKey(0)
    k_p, k_x, k_t, k_c = jax.random.split(key, 4)
    params = build_params(k_p, hidden, d_state, expand, time_emb_dim)

    x = jax.random.normal(k_x, (B, hidden, H, W), jnp.float32)   # NCHW like PyTorch
    t = jax.random.normal(k_t, (B, time_emb_dim), jnp.float32)
    c = jax.random.normal(k_c, (B, 256), jnp.float32)            # context (unused, cross=False)

    out = mamba_block_forward(params, x, c, t)
    out = jax.block_until_ready(out)

    assert out.shape == (B, hidden, H, W), out.shape
    assert bool(jnp.all(jnp.isfinite(out)))
    print("KERNEL_OK")
</pallas_src>

<mosaic_0001>
module attributes {stable_mosaic.version = 11 : i64} {
  func.func @_matmul_kernel(%arg0: i32, %arg1: memref<2x32xf32, #tpu.memory_space<vmem>>, %arg2: memref<32x192xbf16, #tpu.memory_space<vmem>>, %arg3: memref<2x192xf32, #tpu.memory_space<vmem>>) attributes {dimension_semantics = [#tpu.dimension_semantics<parallel>], iteration_bounds = array<i64: 1>, scalar_prefetch = 0 : i64, scratch_operands = 0 : i64, tpu.core_type = #tpu.core_type<tc>, window_params = [{transform_indices = @transform_0, window_bounds = array<i64: 2, 32>}, {pipeline_mode = #tpu.pipeline_mode<synchronous>, transform_indices = @transform_1, window_bounds = array<i64: 32, 192>}, {transform_indices = @transform_2, window_bounds = array<i64: 2, 192>}]} {
    %c0 = arith.constant 0 : index
    %c0_0 = arith.constant 0 : index
    %0 = vector.load %arg1[%c0, %c0_0] : memref<2x32xf32, #tpu.memory_space<vmem>>, vector<2x32xf32>
    %1 = arith.truncf %0 : vector<2x32xf32> to vector<2x32xbf16>
    %c0_1 = arith.constant 0 : index
    %c0_2 = arith.constant 0 : index
    %2 = vector.load %arg2[%c0_1, %c0_2] : memref<32x192xbf16, #tpu.memory_space<vmem>>, vector<32x192xbf16>
    %cst = arith.constant dense<0.000000e+00> : vector<2x192xf32>
    %3 = tpu.matmul %1, %2, %cst {dimension_numbers = #tpu.dot_dimension_numbers<[1], [0], [0], [1], [0, 0, 1, 1], [], []>} : vector<2x32xbf16>, vector<32x192xbf16>, vector<2x192xf32> -> vector<2x192xf32>
    %c0_3 = arith.constant 0 : index
    %c0_4 = arith.constant 0 : index
    %4 = vector.load %arg3[%c0_3, %c0_4] : memref<2x192xf32, #tpu.memory_space<vmem>>, vector<2x192xf32>
    tpu.vector_store %arg3[%c0_3, %c0_4], %3 {strides = array<i32>} : memref<2x192xf32, #tpu.memory_space<vmem>>, vector<2x192xf32>,
    return
  }
  func.func @transform_0(%arg0: i32) -> (i32, i32) {
    %c0_i32 = arith.constant 0 : i32
    %c0_i32_0 = arith.constant 0 : i32
    return %arg0, %c0_i32 : i32, i32
  }
  func.func @transform_1(%arg0: i32) -> (i32, i32) {
    %c0_i32 = arith.constant 0 : i32
    %c0_i32_0 = arith.constant 0 : i32
    %c0_i32_1 = arith.constant 0 : i32
    return %c0_i32, %c0_i32_0 : i32, i32
  }
  func.func @transform_2(%arg0: i32) -> (i32, i32) {
    %c0_i32 = arith.constant 0 : i32
    %c0_i32_0 = arith.constant 0 : i32
    return %arg0, %c0_i32 : i32, i32
  }
}

</mosaic_0001>

<bundles_post_ra>
// kernel: tpu_custom_call.1
= control target key start
LH: loop header
LB: loop body
LE: loop exit
PB: predicated region body
PF: predicated region fallthrough
CT: control target
= control target key end

     0   :  { %7 = vsyncpa [#allocation3], 0  ;;  %s296_s0 = inlined_call_operand.hbm [shape: f32[2,32], index: 0, kind: input, shape index: {}]   ;;  %s297_s1 = inlined_call_operand.hbm [shape: bf16[32,192], index: 1, kind: input, shape index: {}]   ;;  %s298_s2 = inlined_call_operand.hbm [shape: f32[2,192], index: 2, kind: output, shape index: {}]  }
   0x1   :  { %8 = vsyncpa [#allocation6], 0 }
   0x2   :  { %9 = vsyncpa [#allocation4], 0  ;;  %s231_s9 = smov [#allocation2]   ;;  %s232_s11 = smov [#allocation5]  }
   0x3   :  { %s16_s10 = sshll.u32 %s231_s9, 4  ;;  %s25_s12 = sshll.u32 %s232_s11, 4  ;;  %s17_s10 = int_to_ptr.vmem [resolvable:$true] %s16_s10  ;;  %s253_s12 = int_to_ptr.vmem [resolvable:$true] %s25_s12 }
   0x4   :  { %s159_s15 = scalar_lea.hbm %s296_s0, 32 }
   0x5   :  { %p160_p0 = scmp.ne.s32.totalorder %s296_s0, %s159_s15  ;;  %p163_p1 = scmp.lt.u32.totalorder %s159_s15, %s296_s0 }
   0x7   :  { %p165_p2 = pnand %p163_p1, %p160_p0 }
   0x9   :  { %168 = shalt.err (!%p165_p2)
}
   0xa   :  { %s169_s20 = scalar_lea.vmem %s17_s10, 32  ;;  %p174_p4 = scmp.lt.s32.totalorder %s17_s10, %s17_s10 }
   0xb   :  { %p170_p3 = scmp.ne.s32.totalorder %s17_s10, %s169_s20  ;;  %p175_p5 = scmp.lt.s32.totalorder %s169_s20, %s169_s20 }
   0xd   :  { %p176_p6 = por %p175_p5, %p174_p4 }
   0xf   :  { %p177_p7 = pnand %p176_p6, %p170_p3 }
  0x11   :  { %180 = shalt.err (!%p177_p7)
}
  0x12   :  { %19 = dma.hbm_to_vmem [thread:$0]  %s296_s0, 32, %s17_s10, [#allocation3]  }
  0x13   :  { %s181_s25 = scalar_lea.hbm %s297_s1, 512 }
  0x14   :  { %p182_p8 = scmp.ne.s32.totalorder %s297_s1, %s181_s25  ;;  %p185_p9 = scmp.lt.u32.totalorder %s181_s25, %s297_s1 }
  0x16   :  { %p187_p10 = pnand %p185_p9, %p182_p8 }
  0x18   :  { %190 = shalt.err (!%p187_p10)
}
  0x19   :  { %s191_s30 = scalar_lea.vmem %s253_s12, 512  ;;  %p196_p12 = scmp.lt.s32.totalorder %s253_s12, %s253_s12 }
  0x1a   :  { %p192_p11 = scmp.ne.s32.totalorder %s253_s12, %s191_s30  ;;  %p197_p13 = scmp.lt.s32.totalorder %s191_s30, %s191_s30 }
  0x1c   :  { %p198_p0 = por %p197_p13, %p196_p12 }
  0x1e   :  { %p199_p1 = pnand %p198_p0, %p192_p11 }
  0x20   :  { %202 = shalt.err (!%p199_p1)
}
  0x21   :  { %s233_s0 = smov 128   ;;  %s234_s3 = smov 8  }
  0x22   :  { %31 = dma.hbm_to_vmem [thread:$0]  %s297_s1, 512, %s253_s12, [#allocation6], %s233_s0, %s233_s0, %s234_s3  }
  0x23   :  { %225 = dma.done.wait [#allocation3], 32  }
  0x24   :  { %226 = vsyncadd [#allocation3], 4294967264 }
  0x25   :  { %227 = dma.done.wait [#allocation6], 512  }
  0x26   :  { %228 = vsyncadd [#allocation6], 4294966784  ;;  %v235_v0 = vmov 0   ;;  %v153_v1 = vld [vmem:[#allocation5 + $0x4] ss:$8 sps:$4 sm:$0xff]   ;;  %vm65_vm0 = vcmask 261120   ;;  %v116_v9 = vlaneseq }
  0x27   :  { %101 = vmatprep.mubr.bf16.mxu0 %v235_v0  ;;  %v155_v2 = vld [vmem:[#allocation5] ss:$8 sps:$4 sm:$0xff]   ;;  %69 = vmatprep.subr.bf16.mxu0 %v153_v1  ;;  %v156_v3 = vld [vmem:[#allocation5 + $0x14] ss:$8 sps:$4 sm:$0xff]   ;;  %v158_v4 = vld [vmem:[#allocation5 + $0x10] ss:$8 sps:$4 sm:$0xff]  }
  0x28   :  { %70 = vmatpush1.bf16.msra.mxu0 %v155_v2  ;;  %v39_v5 = vld [vmem:[#allocation2] sm:$0x3]  ;;  %v236_v7 = vmov 1983009808   ;;  %v117_v11 = vshrl.u32 %v116_v9, 7  ;;  %vm121_vm1 = vcmask 1041408  }
  0x29   :  { %71 = vmatprep.subr.bf16.mxu0 %v156_v3  ;;  %v40_v6 = vpack.c.bf16 %v39_v5, %v39_v5  ;;  %v114_v8 = vunpack.c.l.s4 %v236_v7  ;;  %vm122_vm2 = vcmask 519170   ;;  %s237_s1 = smov [#allocation7]  }
  0x2a   :  { %s131_s6 = sshll.u32 %s237_s1, 4  ;;  %vm123_vm3 = vmor %vm122_vm2, %vm121_vm1  ;;  %s132_s6 = int_to_ptr.vmem [resolvable:$true] %s131_s6 }
  0x2b   :  { %v115_v10 = vunpack.c.0.s8 %v114_v8  ;;  %s203_s7 = scalar_lea.vmem %s132_s6, 64  ;;  %p208_p3 = scmp.lt.s32.totalorder %s132_s6, %s132_s6 }
  0x2c   :  { %72 = vmatpush1.bf16.msra.mxu0 %v158_v4  ;;  %p204_p2 = scmp.ne.s32.totalorder %s132_s6, %s203_s7  ;;  %p209_p4 = scmp.lt.s32.totalorder %s203_s7, %s203_s7 }
  0x2d   :  { %v118_v13 = vsub.s32 %v115_v10, %v117_v11 }
  0x2e   :  { %p210_p5 = por %p209_p4, %p208_p3 }
  0x2f   :  { %145 = vmatmul.mubr.msk.bf16.vlgmr.msra.gmra.mrb[0].mxu0 %vm65_vm0, %v40_v6 }
  0x30   :  { %p211_p6 = pnand %p210_p5, %p204_p2 }
 0x102   :  { %v103_v12 = vpop.f32.mrb[0].mxu0 }
 0x103   :  { %v105_v14 = vpop.f32.mrb[1].mxu0 }
 0x104   :  { %v112_v15 = vcombine.low %v103_v12, %v105_v14  ;;  %v107_v16 = vpop.f32.mrb[2].mxu0 }
 0x105   :  { %v108_v17 = vpop.f32.mrb[3].mxu0 }
 0x106   :  { %v119_v18 = vrot.slane %v112_v15, %v118_v13 }
 0x108   :  { %124 = vst.msk [vmem:[#allocation7] sm:$0xf] %vm123_vm3, %v119_v18 }
 0x109   :  { %214 = shalt.err (!%p211_p6)
}
 0x10a   :  { %s215_s10 = scalar_lea.hbm %s298_s2, 64 }
 0x10b   :  { %p216_p7 = scmp.ne.s32.totalorder %s298_s2, %s215_s10  ;;  %p219_p8 = scmp.lt.u32.totalorder %s215_s10, %s298_s2 }
 0x10d   :  { %p221_p9 = pnand %p219_p8, %p216_p7 }
 0x10f   :  { %224 = shalt.err (!%p221_p9)
}
 0x110   :  { %134 = dma.vmem_to_hbm [thread:$0]  %s132_s6, 64, %s298_s2, [#allocation4]  }
 0x111   :  { %229 = dma.done.wait [#allocation4], 64  }
 0x112   :  { %230 = vsyncadd [#allocation4], 4294967232 }
 0x113   :  { %138 = vsyncpa [#allocation3], 1 }
 0x114   :  { %139 = vsyncpa [#allocation6], 1 }
 0x115   :  { %140 = vsyncpa [#allocation4], 1 }

</bundles_post_ra>
